<compile_context>
chip_gen: v7x
topology: tpu7x:2x2x1
jax: 0.10.0
libtpu: 0.0.40
codegen_flags: <defaults>
</compile_context>

<pallas_src>
import functools

import jax
import jax.numpy as jnp
from jax.experimental import pallas as pl
from jax.experimental.pallas import tpu as pltpu


def _round_up(x, m):
    return ((x + m - 1) // m) * m


def _choose_tile_m(n, tile_m):
    """Row-tile size: single block for small batches, otherwise >=2 roughly
    equal blocks of at most `tile_m` rows (keeps both v7x TCs busy, amortizes
    the ~0.35us/step overhead on v5e/v6e)."""
    if n <= 512:
        return _round_up(max(n, 8), 8)
    n_blocks = max(2, pl.cdiv(n, tile_m))
    return min(tile_m, _round_up(pl.cdiv(n, n_blocks), 8))


def temp_scale_kernel(t_ref, x_ref, w_ref, b_ref, o_ref):
    # t_ref: (1,) scalar temperature in SMEM
    # x_ref: (tm, D) tile;  w_ref: (D, C_pad) resident;  b_ref: (1, C_pad)
    inv_t = 1.0 / t_ref[0]                                 # scalar recip, once/step
    logits = jnp.dot(x_ref[...], w_ref[...],
                     preferred_element_type=jnp.float32) + b_ref[...]
    o_ref[...] = logits * inv_t                            # broadcast scalar multiply


@functools.partial(jax.jit, static_argnames=("tile_m",))
def model_with_temperature_forward(x, w, b, temperature, *, tile_m=1024):
    """Fused forward: linear classifier -> temperature scaling.

    x: (N, D) f32, w: (D, C) f32, b: (C,) f32, temperature: (1,) f32.
    Returns (N, C) f32 logits / temperature.
    """
    N, D = x.shape
    D2, C = w.shape
    assert D == D2

    # Lane-dense last dim for the MXU feed and the output stores.
    C_pad = max(_round_up(C, 128), 128)

    tm = _choose_tile_m(N, tile_m)
    grid = (pl.cdiv(N, tm),)

    # Only the tiny constant operands get padded (fuses under jit); x is used
    # as-is -- no N/D padding, no dtype cast.
    w_p = jnp.pad(w, ((0, 0), (0, C_pad - C)))
    b_p = jnp.pad(b.reshape(1, C), ((0, 0), (0, C_pad - C))).astype(jnp.float32)
    t = temperature.reshape(1).astype(jnp.float32)

    # Accurate VMEM budget: double-buffered x/out tiles + resident W + bias,
    # 2x headroom, capped well under v7x's 64 MiB physical VMEM.
    need = (2 * tm * D * 4            # x tiles (double-buffered, f32)
            + 2 * tm * C_pad * 4      # output tiles (f32)
            + 2 * D * C_pad * 4       # W (resident; compiler may double-buffer)
            + 2 * C_pad * 4)          # bias
    vmem_limit = int(min(max(need * 2, 4 << 20), 48 << 20))

    cost = pl.CostEstimate(
        flops=2 * N * D * C_pad,
        transcendentals=0,
        bytes_accessed=(N * D * 4 + D * C_pad * 4 + C_pad * 4 + N * C_pad * 4),
    )

    out = pl.pallas_call(
        temp_scale_kernel,
        out_shape=jax.ShapeDtypeStruct((N, C_pad), jnp.float32),
        grid_spec=pltpu.PrefetchScalarGridSpec(
            num_scalar_prefetch=0,
            grid=grid,
            in_specs=[
                pl.BlockSpec(memory_space=pltpu.MemorySpace.SMEM),  # temperature (1,)
                pl.BlockSpec((tm, D), lambda i: (i, 0)),            # x tile (full D)
                pl.BlockSpec((D, C_pad), lambda i: (0, 0)),         # W (resident)
                pl.BlockSpec((1, C_pad), lambda i: (0, 0)),         # bias
            ],
            out_specs=pl.BlockSpec((tm, C_pad), lambda i: (i, 0)),
        ),
        compiler_params=pltpu.CompilerParams(
            dimension_semantics=("parallel",),
            vmem_limit_bytes=vmem_limit,
        ),
        cost_estimate=cost,
    )(t, x, w_p, b_p)

    # Trim only the padded columns; rows are already exactly N.
    return out[:, :C]


def _reference(x, w, b, temperature):
    logits = jnp.dot(x, w, precision=jax.lax.Precision.HIGHEST) + b
    return logits / temperature[0]


if __name__ == "__main__":
    key = jax.random.PRNGKey(0)
    kx, kw, kb, kx2 = jax.random.split(key, 4)

    # Small, classifier-head-like shapes (non-aligned on purpose to exercise
    # the ragged-tail / column-pad path).
    N, D, C = 200, 96, 10
    x = jax.random.normal(kx, (N, D), dtype=jnp.float32)
    w = jax.random.normal(kw, (D, C), dtype=jnp.float32) * 0.1
    b = jax.random.normal(kb, (C,), dtype=jnp.float32) * 0.1

    # nn.Parameter(torch.ones(1)) -> shape (1,); non-unit value so the
    # scaling is actually exercised.
    temperature = jnp.full((1,), 1.5, dtype=jnp.float32)

    out = jax.block_until_ready(model_with_temperature_forward(x, w, b, temperature))
    ref = _reference(x, w, b, temperature)
    assert out.shape == (N, C)
    assert jnp.allclose(out, ref, atol=1e-3, rtol=1e-3), \
        float(jnp.max(jnp.abs(out - ref)))

    # Larger batch: exercises the multi-block, balanced grid (2 blocks of 552
    # rows for N=1100) and the masked ragged-tail writeback.
    N2 = 1100
    x2 = jax.random.normal(kx2, (N2, D), dtype=jnp.float32)
    out2 = jax.block_until_ready(model_with_temperature_forward(x2, w, b, temperature))
    ref2 = _reference(x2, w, b, temperature)
    assert out2.shape == (N2, C)
    assert jnp.allclose(out2, ref2, atol=1e-3, rtol=1e-3), \
        float(jnp.max(jnp.abs(out2 - ref2)))

    print("KERNEL_OK")
</pallas_src>

<mosaic_0001>
module attributes {stable_mosaic.version = 11 : i64} {
  func.func @temp_scale_kernel(%arg0: i32, %arg1: memref<1xf32, #tpu.memory_space<smem>>, %arg2: memref<200x96xf32, #tpu.memory_space<vmem>>, %arg3: memref<96x128xf32, #tpu.memory_space<vmem>>, %arg4: memref<1x128xf32, #tpu.memory_space<vmem>>, %arg5: memref<200x128xf32, #tpu.memory_space<vmem>>) attributes {dimension_semantics = [#tpu.dimension_semantics<parallel>], iteration_bounds = array<i64: 1>, scalar_prefetch = 0 : i64, scratch_operands = 0 : i64, tpu.core_type = #tpu.core_type<tc>, window_params = [{transform_indices = @transform_0, window_bounds = array<i64: 1>}, {transform_indices = @transform_1, window_bounds = array<i64: 200, 96>}, {pipeline_mode = #tpu.pipeline_mode<synchronous>, transform_indices = @transform_2, window_bounds = array<i64: 96, 128>}, {pipeline_mode = #tpu.pipeline_mode<synchronous>, transform_indices = @transform_3, window_bounds = array<i64: 1, 128>}, {transform_indices = @transform_4, window_bounds = array<i64: 200, 128>}]} {
    %c0 = arith.constant 0 : index
    %0 = memref.load %arg1[%c0] : memref<1xf32, #tpu.memory_space<smem>>
    %cst = arith.constant 1.000000e+00 : f32
    %1 = arith.divf %cst, %0 : f32
    %c0_0 = arith.constant 0 : index
    %c0_1 = arith.constant 0 : index
    %2 = vector.load %arg2[%c0_0, %c0_1] : memref<200x96xf32, #tpu.memory_space<vmem>>, vector<200x96xf32>
    %c0_2 = arith.constant 0 : index
    %c0_3 = arith.constant 0 : index
    %3 = vector.load %arg3[%c0_2, %c0_3] : memref<96x128xf32, #tpu.memory_space<vmem>>, vector<96x128xf32>
    %cst_4 = arith.constant dense<0.000000e+00> : vector<200x128xf32>
    %4 = tpu.matmul %2, %3, %cst_4 {dimension_numbers = #tpu.dot_dimension_numbers<[1], [0], [0], [1], [0, 0, 1, 1], [], []>} : vector<200x96xf32>, vector<96x128xf32>, vector<200x128xf32> -> vector<200x128xf32>
    %c0_5 = arith.constant 0 : index
    %c0_6 = arith.constant 0 : index
    %5 = vector.load %arg4[%c0_5, %c0_6] : memref<1x128xf32, #tpu.memory_space<vmem>>, vector<1x128xf32>
    %6 = vector.broadcast %5 : vector<1x128xf32> to vector<200x128xf32>
    %7 = arith.addf %4, %6 : vector<200x128xf32>
    %8 = vector.broadcast %1 : f32 to vector<200x128xf32>
    %9 = arith.mulf %7, %8 : vector<200x128xf32>
    %c0_7 = arith.constant 0 : index
    %c0_8 = arith.constant 0 : index
    %10 = vector.load %arg5[%c0_7, %c0_8] : memref<200x128xf32, #tpu.memory_space<vmem>>, vector<200x128xf32>
    tpu.vector_store %arg5[%c0_7, %c0_8], %9 {strides = array<i32>} : memref<200x128xf32, #tpu.memory_space<vmem>>, vector<200x128xf32>,
    return
  }
  func.func @transform_0(%arg0: i32) -> i32 {
    %c0_i32 = arith.constant 0 : i32
    %c0_i32_0 = arith.constant 0 : i32
    return %c0_i32 : i32
  }
  func.func @transform_1(%arg0: i32) -> (i32, i32) {
    %c0_i32 = arith.constant 0 : i32
    %c0_i32_0 = arith.constant 0 : i32
    return %arg0, %c0_i32 : i32, i32
  }
  func.func @transform_2(%arg0: i32) -> (i32, i32) {
    %c0_i32 = arith.constant 0 : i32
    %c0_i32_0 = arith.constant 0 : i32
    %c0_i32_1 = arith.constant 0 : i32
    return %c0_i32, %c0_i32_0 : i32, i32
  }
  func.func @transform_3(%arg0: i32) -> (i32, i32) {
    %c0_i32 = arith.constant 0 : i32
    %c0_i32_0 = arith.constant 0 : i32
    %c0_i32_1 = arith.constant 0 : i32
    return %c0_i32, %c0_i32_0 : i32, i32
  }
  func.func @transform_4(%arg0: i32) -> (i32, i32) {
    %c0_i32 = arith.constant 0 : i32
    %c0_i32_0 = arith.constant 0 : i32
    return %arg0, %c0_i32 : i32, i32
  }
}

</mosaic_0001>

<bundles_post_ra>
// kernel: model_with_temperature_forward.1
= control target key start
LH: loop header
LB: loop body
LE: loop exit
PB: predicated region body
PF: predicated region fallthrough
CT: control target
= control target key end

     0   :  { %v586_v0 = vmov 0.0|0.0   ;;  %vm587_vm0 = vmmov 0   ;;  %v588_v7 = vmov 0.0   ;;  %vm66_vm1 = vcmask 785408   ;;  %s935_s2 = inlined_call_operand.vmem [shape: f32[96,128], index: 2, kind: input, shape index: {}]   ;;  %s936_s0 = inlined_call_operand.<no memory space> [shape: f32[1], index: 0, kind: input, shape index: {}]   ;;  %s937_s1 = inlined_call_operand.vmem [shape: f32[200,96], index: 1, kind: input, shape index: {}]   ;;  %s938_s3 = inlined_call_operand.vmem [shape: f32[1,128], index: 3, kind: input, shape index: {}]   ;;  %s939_s4 = inlined_call_operand.vmem [shape: f32[200,128], index: 4, kind: output, shape index: {}]  }
   0x1   :  { %549 = vmatprep.subr.bf16.mxu0 %v586_v0  ;;  %v47_v1 = vld [vmem:[%s935_s2] sm:$0xff]  ;;  %v48_v2 = vld [vmem:[%s935_s2 + $0x8] sm:$0xff]  ;;  %567 = vmatprep.subr.bf16.mxu1 %v586_v0  ;;  %v49_v3 = vld [vmem:[%s935_s2 + $0x10] sm:$0xff]  ;;  %v19_v4 = vstv %s936_s0 }
   0x2   :  { %v550_v5 = vpack.c.bf16 %v48_v2, %v47_v1  ;;  %v50_v6 = vld [vmem:[%s935_s2 + $0x18] sm:$0xff]  ;;  %474 = vmatprep.mubr.msk.f32.mxu0 %vm587_vm0, %v588_v7  ;;  %513 = vmatprep.mubr.msk.f32.mxu1 %vm587_vm0, %v588_v7  ;;  %584 = vrcp.f32 %v19_v4  ;;  %v51_v9 = vld [vmem:[%s935_s2 + $0x20] sm:$0xff]  ;;  %v52_v10 = vld [vmem:[%s935_s2 + $0x28] sm:$0xff] }
   0x3   :  { %v553_v8 = vpack.c.bf16 %v50_v6, %v49_v3  ;;  %v556_v11 = vpack.c.bf16 %v52_v10, %v51_v9  ;;  %v53_v12 = vld [vmem:[%s935_s2 + $0x30] sm:$0xff]  ;;  %v54_v13 = vld [vmem:[%s935_s2 + $0x38] sm:$0xff]  ;;  %v55_v16 = vld [vmem:[%s935_s2 + $0x40] sm:$0xff] }
   0x4   :  { %551 = vmatpush3.bf16.msra.mxu0 %v550_v5  ;;  %573 = vmatpush3.bf16.msra.mxu1 %v550_v5  ;;  %v559_v15 = vpack.c.bf16 %v54_v13, %v53_v12  ;;  %v56_v17 = vld [vmem:[%s935_s2 + $0x48] sm:$0xff]  ;;  %v57_v19 = vld [vmem:[%s935_s2 + $0x50] sm:$0xff]  ;;  %v58_v20 = vld [vmem:[%s935_s2 + $0x58] sm:$0xff] }
   0x5   :  { %552 = vmatprep.subr.bf16.mxu0 %v586_v0  ;;  %568 = vmatprep.subr.bf16.mxu1 %v586_v0  ;;  %v562_v18 = vpack.c.bf16 %v56_v17, %v55_v16  ;;  %v565_v21 = vpack.c.bf16 %v58_v20, %v57_v19  ;;  %v22_v22 = vld [vmem:[%s937_s1] sm:$0xff]  ;;  %v35_v23 = vld [vmem:[%s937_s1 + $0x68] sm:$0xff]  ;;  %v36_v25 = vld [vmem:[%s937_s1 + $0x70] sm:$0xff] }
   0x6   :  { %v23_v24 = vld [vmem:[%s937_s1 + $0x8] sm:$0xff]  ;;  %v24_v26 = vld [vmem:[%s937_s1 + $0x10] sm:$0xff]  ;;  %v37_v27 = vld [vmem:[%s937_s1 + $0x78] sm:$0xff] }
   0x7   :  { %v25_v28 = vld [vmem:[%s937_s1 + $0x18] sm:$0xff]  ;;  %v38_v29 = vld [vmem:[%s937_s1 + $0x80] sm:$0xff]  ;;  %v39_v31 = vld [vmem:[%s937_s1 + $0x88] sm:$0xff] }
   0x8   :  { %554 = vmatpush3.bf16.msra.mxu0 %v553_v8  ;;  %574 = vmatpush3.bf16.msra.mxu1 %v553_v8  ;;  %v26_v30 = vld [vmem:[%s937_s1 + $0x20] sm:$0xff]  ;;  %v27_v32 = vld [vmem:[%s937_s1 + $0x28] sm:$0xff]  ;;  %v40_v33 = vld [vmem:[%s937_s1 + $0x90] sm:$0xff] }
   0x9   :  { %555 = vmatprep.subr.bf16.mxu0 %v586_v0  ;;  %569 = vmatprep.subr.bf16.mxu1 %v586_v0  ;;  %v28_v34 = vld [vmem:[%s937_s1 + $0x30] sm:$0xff]  ;;  %v41_v35 = vld [vmem:[%s937_s1 + $0x98] sm:$0xff]  ;;  %v42_v37 = vld [vmem:[%s937_s1 + $0xa0] sm:$0xff] }
   0xa   :  { %v29_v36 = vld [vmem:[%s937_s1 + $0x38] sm:$0xff]  ;;  %v30_v38 = vld [vmem:[%s937_s1 + $0x40] sm:$0xff]  ;;  %v43_v39 = vld [vmem:[%s937_s1 + $0xa8] sm:$0xff] }
   0xb   :  { %v31_v40 = vld [vmem:[%s937_s1 + $0x48] sm:$0xff]  ;;  %v44_v41 = vld [vmem:[%s937_s1 + $0xb0] sm:$0xff]  ;;  %v45_v43 = vld [vmem:[%s937_s1 + $0xb8] sm:$0xff] }
   0xc   :  { %v585_v14 = vpop.eup %584  ;;  %557 = vmatpush3.bf16.msra.mxu0 %v556_v11  ;;  %575 = vmatpush3.bf16.msra.mxu1 %v556_v11  ;;  %v32_v42 = vld [vmem:[%s937_s1 + $0x50] sm:$0xff]  ;;  %v33_v44 = vld [vmem:[%s937_s1 + $0x58] sm:$0xff]  ;;  %v46_v45 = vld [vmem:[%s937_s1 + $0xc0] sm:$0xff] }
   0xd   :  { %558 = vmatprep.subr.bf16.mxu0 %v586_v0  ;;  %570 = vmatprep.subr.bf16.mxu1 %v586_v0  ;;  %579 = vpush %v585_v14  ;;  %v34_v46 = vld [vmem:[%s937_s1 + $0x60] sm:$0xff] }
   0xe   :  { %v806_v47 = vld [vmem:[%s938_s3] ss:$0 sm:$0xff] }
  0x10   :  { %560 = vmatpush3.bf16.msra.mxu0 %v559_v15  ;;  %576 = vmatpush3.bf16.msra.mxu1 %v559_v15 }
  0x11   :  { %561 = vmatprep.subr.bf16.mxu0 %v586_v0  ;;  %571 = vmatprep.subr.bf16.mxu1 %v586_v0 }
  0x14   :  { %563 = vmatpush3.bf16.msra.mxu0 %v562_v18  ;;  %577 = vmatpush3.bf16.msra.mxu1 %v562_v18 }
  0x15   :  { %564 = vmatprep.subr.bf16.mxu0 %v586_v0  ;;  %572 = vmatprep.subr.bf16.mxu1 %v586_v0 }
  0x18   :  { %566 = vmatpush3.bf16.msra.mxu0 %v565_v21  ;;  %578 = vmatpush3.bf16.msra.mxu1 %v565_v21 }
  0x1b   :  { %475 = vmatmul.mubr.msk.f32.vlgmr.msra.gmra.mrb[0].mxu0 %vm66_vm1, %v22_v22  ;;  %514 = vmatmul.mubr.msk.f32.vlgmr.msra.gmra.mrb[0].mxu1 %vm66_vm1, %v35_v23 }
  0x1c   :  { %477 = vmatprep.mubr.msk.f32.mxu0 %vm587_vm0, %v588_v7  ;;  %516 = vmatprep.mubr.msk.f32.mxu1 %vm587_vm0, %v588_v7 }
  0x1f   :  { %478 = vmatmul.mubr.msk.f32.gmra.mrb[2].mxu0 %vm66_vm1, %v23_v24  ;;  %517 = vmatmul.mubr.msk.f32.gmra.mrb[2].mxu1 %vm66_vm1, %v36_v25 }
  0x20   :  { %480 = vmatprep.mubr.msk.f32.mxu0 %vm587_vm0, %v588_v7  ;;  %519 = vmatprep.mubr.msk.f32.mxu1 %vm587_vm0, %v588_v7 }
  0x23   :  { %481 = vmatmul.mubr.msk.f32.gmra.mrb[4].mxu0 %vm66_vm1, %v24_v26  ;;  %520 = vmatmul.mubr.msk.f32.gmra.mrb[4].mxu1 %vm66_vm1, %v37_v27 }
  0x24   :  { %483 = vmatprep.mubr.msk.f32.mxu0 %vm587_vm0, %v588_v7  ;;  %522 = vmatprep.mubr.msk.f32.mxu1 %vm587_vm0, %v588_v7 }
  0x27   :  { %484 = vmatmul.mubr.msk.f32.gmra.mrb[6].mxu0 %vm66_vm1, %v25_v28  ;;  %523 = vmatmul.mubr.msk.f32.gmra.mrb[6].mxu1 %vm66_vm1, %v38_v29 }
  0x28   :  { %486 = vmatprep.mubr.msk.f32.mxu0 %vm587_vm0, %v588_v7  ;;  %525 = vmatprep.mubr.msk.f32.mxu1 %vm587_vm0, %v588_v7 }
  0x2b   :  { %487 = vmatmul.mubr.msk.f32.gmra.mrb[8].mxu0 %vm66_vm1, %v26_v30  ;;  %526 = vmatmul.mubr.msk.f32.gmra.mrb[8].mxu1 %vm66_vm1, %v39_v31 }
  0x2c   :  { %489 = vmatprep.mubr.msk.f32.mxu0 %vm587_vm0, %v588_v7  ;;  %528 = vmatprep.mubr.msk.f32.mxu1 %vm587_vm0, %v588_v7 }
  0x2f   :  { %490 = vmatmul.mubr.msk.f32.gmra.mrb[10].mxu0 %vm66_vm1, %v27_v32  ;;  %529 = vmatmul.mubr.msk.f32.gmra.mrb[10].mxu1 %vm66_vm1, %v40_v33 }
  0x30   :  { %492 = vmatprep.mubr.msk.f32.mxu0 %vm587_vm0, %v588_v7  ;;  %531 = vmatprep.mubr.msk.f32.mxu1 %vm587_vm0, %v588_v7 }
  0x33   :  { %493 = vmatmul.mubr.msk.f32.gmra.mrb[12].mxu0 %vm66_vm1, %v28_v34  ;;  %532 = vmatmul.mubr.msk.f32.gmra.mrb[12].mxu1 %vm66_vm1, %v41_v35 }
  0x34   :  { %495 = vmatprep.mubr.msk.f32.mxu0 %vm587_vm0, %v588_v7  ;;  %534 = vmatprep.mubr.msk.f32.mxu1 %vm587_vm0, %v588_v7 }
  0x37   :  { %496 = vmatmul.mubr.msk.f32.gmra.mrb[14].mxu0 %vm66_vm1, %v29_v36  ;;  %535 = vmatmul.mubr.msk.f32.gmra.mrb[14].mxu1 %vm66_vm1, %v42_v37 }
  0x38   :  { %498 = vmatprep.mubr.msk.f32.mxu0 %vm587_vm0, %v588_v7  ;;  %537 = vmatprep.mubr.msk.f32.mxu1 %vm587_vm0, %v588_v7 }
  0x3b   :  { %499 = vmatmul.mubr.msk.f32.gmra.mrb[16].mxu0 %vm66_vm1, %v30_v38  ;;  %538 = vmatmul.mubr.msk.f32.gmra.mrb[16].mxu1 %vm66_vm1, %v43_v39 }
  0x3c   :  { %501 = vmatprep.mubr.msk.f32.mxu0 %vm587_vm0, %v588_v7  ;;  %540 = vmatprep.mubr.msk.f32.mxu1 %vm587_vm0, %v588_v7 }
  0x3e   :  { %s580_s8 = spop %579 }
  0x3f   :  { %502 = vmatmul.mubr.msk.f32.gmra.mrb[18].mxu0 %vm66_vm1, %v31_v40  ;;  %541 = vmatmul.mubr.msk.f32.gmra.mrb[18].mxu1 %vm66_vm1, %v44_v41  ;;  %v808_v49 = vstv %s580_s8 }
  0x40   :  { %504 = vmatprep.mubr.msk.f32.mxu0 %vm587_vm0, %v588_v7  ;;  %543 = vmatprep.mubr.msk.f32.mxu1 %vm587_vm0, %v588_v7 }
  0x43   :  { %505 = vmatmul.mubr.msk.f32.gmra.mrb[20].mxu0 %vm66_vm1, %v32_v42  ;;  %544 = vmatmul.mubr.msk.f32.gmra.mrb[20].mxu1 %vm66_vm1, %v45_v43 }
  0x44   :  { %507 = vmatprep.mubr.msk.f32.mxu0 %vm587_vm0, %v588_v7  ;;  %546 = vmatprep.mubr.msk.f32.mxu1 %vm587_vm0, %v588_v7 }
  0x47   :  { %508 = vmatmul.mubr.msk.f32.gmra.mrb[22].mxu0 %vm66_vm1, %v33_v44  ;;  %547 = vmatmul.mubr.msk.f32.gmra.mrb[22].mxu1 %vm66_vm1, %v46_v45 }
  0x48   :  { %510 = vmatprep.mubr.msk.f32.mxu0 %vm587_vm0, %v588_v7 }
  0x4b   :  { %511 = vmatmul.mubr.msk.f32.gmra.mrb[24].mxu0 %vm66_vm1, %v34_v46 }
  0xee   :  { %v208_v48 = vpop.f32.mrb[0].mxu0  ;;  %v273_v50 = vpop.f32.mrb[0].mxu1 }
  0xef   :  { %v209_v51 = vadd.f32 %v806_v47, %v208_v48  ;;  %v476_v52 = vpop.f32.mrb[1].mxu0  ;;  %v274_v53 = vadd.f32 %v806_v47, %v273_v50  ;;  %v515_v54 = vpop.f32.mrb[1].mxu1 }
  0xf1   :  { %v333_v55 = vmul.f32 %v808_v49, %v209_v51  ;;  %v346_v56 = vmul.f32 %v808_v49, %v274_v53 }
  0xf2   :  { %v213_v57 = vpop.f32.mrb[2].mxu0  ;;  %v278_v58 = vpop.f32.mrb[2].mxu1 }
  0xf3   :  { %358 = vst [vmem:[%s939_s4] sm:$0xff] %v333_v55  ;;  %371 = vst [vmem:[%s939_s4 + $0x68] sm:$0xff] %v346_v56  ;;  %v214_v59 = vadd.f32 %v806_v47, %v213_v57  ;;  %v479_v60 = vpop.f32.mrb[3].mxu0  ;;  %v279_v61 = vadd.f32 %v806_v47, %v278_v58  ;;  %v518_v62 = vpop.f32.mrb[3].mxu1 }
  0xf5   :  { %v334_v63 = vmul.f32 %v808_v49, %v214_v59  ;;  %v347_v0 = vmul.f32 %v808_v49, %v279_v61 }
  0xf6   :  { %v218_v1 = vpop.f32.mrb[4].mxu0  ;;  %v283_v2 = vpop.f32.mrb[4].mxu1 }
  0xf7   :  { %359 = vst [vmem:[%s939_s4 + $0x8] sm:$0xff] %v334_v63  ;;  %372 = vst [vmem:[%s939_s4 + $0x70] sm:$0xff] %v347_v0  ;;  %v219_v3 = vadd.f32 %v806_v47, %v218_v1  ;;  %v482_v4 = vpop.f32.mrb[5].mxu0  ;;  %v284_v5 = vadd.f32 %v806_v47, %v283_v2  ;;  %v521_v6 = vpop.f32.mrb[5].mxu1 }
  0xf9   :  { %v335_v7 = vmul.f32 %v808_v49, %v219_v3  ;;  %v348_v8 = vmul.f32 %v808_v49, %v284_v5 }
  0xfa   :  { %v223_v9 = vpop.f32.mrb[6].mxu0  ;;  %v288_v10 = vpop.f32.mrb[6].mxu1 }
  0xfb   :  { %360 = vst [vmem:[%s939_s4 + $0x10] sm:$0xff] %v335_v7  ;;  %373 = vst [vmem:[%s939_s4 + $0x78] sm:$0xff] %v348_v8  ;;  %v224_v11 = vadd.f32 %v806_v47, %v223_v9  ;;  %v485_v12 = vpop.f32.mrb[7].mxu0  ;;  %v289_v13 = vadd.f32 %v806_v47, %v288_v10  ;;  %v524_v14 = vpop.f32.mrb[7].mxu1 }
  0xfd   :  { %v336_v15 = vmul.f32 %v808_v49, %v224_v11  ;;  %v349_v16 = vmul.f32 %v808_v49, %v289_v13 }
  0xfe   :  { %v228_v17 = vpop.f32.mrb[8].mxu0  ;;  %v293_v18 = vpop.f32.mrb[8].mxu1 }
  0xff   :  { %361 = vst [vmem:[%s939_s4 + $0x18] sm:$0xff] %v336_v15  ;;  %374 = vst [vmem:[%s939_s4 + $0x80] sm:$0xff] %v349_v16  ;;  %v229_v19 = vadd.f32 %v806_v47, %v228_v17  ;;  %v488_v20 = vpop.f32.mrb[9].mxu0  ;;  %v294_v21 = vadd.f32 %v806_v47, %v293_v18  ;;  %v527_v22 = vpop.f32.mrb[9].mxu1 }
 0x101   :  { %v337_v23 = vmul.f32 %v808_v49, %v229_v19  ;;  %v350_v24 = vmul.f32 %v808_v49, %v294_v21 }
 0x102   :  { %v233_v25 = vpop.f32.mrb[10].mxu0  ;;  %v298_v26 = vpop.f32.mrb[10].mxu1 }
 0x103   :  { %362 = vst [vmem:[%s939_s4 + $0x20] sm:$0xff] %v337_v23  ;;  %375 = vst [vmem:[%s939_s4 + $0x88] sm:$0xff] %v350_v24  ;;  %v234_v27 = vadd.f32 %v806_v47, %v233_v25  ;;  %v491_v28 = vpop.f32.mrb[11].mxu0  ;;  %v299_v29 = vadd.f32 %v806_v47, %v298_v26  ;;  %v530_v30 = vpop.f32.mrb[11].mxu1 }
 0x105   :  { %v338_v31 = vmul.f32 %v808_v49, %v234_v27  ;;  %v351_v32 = vmul.f32 %v808_v49, %v299_v29 }
 0x106   :  { %v238_v33 = vpop.f32.mrb[12].mxu0  ;;  %v303_v34 = vpop.f32.mrb[12].mxu1 }
 0x107   :  { %363 = vst [vmem:[%s939_s4 + $0x28] sm:$0xff] %v338_v31  ;;  %376 = vst [vmem:[%s939_s4 + $0x90] sm:$0xff] %v351_v32  ;;  %v239_v35 = vadd.f32 %v806_v47, %v238_v33  ;;  %v494_v36 = vpop.f32.mrb[13].mxu0  ;;  %v304_v37 = vadd.f32 %v806_v47, %v303_v34  ;;  %v533_v38 = vpop.f32.mrb[13].mxu1 }
 0x109   :  { %v339_v39 = vmul.f32 %v808_v49, %v239_v35  ;;  %v352_v40 = vmul.f32 %v808_v49, %v304_v37 }
 0x10a   :  { %v243_v41 = vpop.f32.mrb[14].mxu0  ;;  %v308_v42 = vpop.f32.mrb[14].mxu1 }
 0x10b   :  { %364 = vst [vmem:[%s939_s4 + $0x30] sm:$0xff] %v339_v39  ;;  %377 = vst [vmem:[%s939_s4 + $0x98] sm:$0xff] %v352_v40  ;;  %v244_v43 = vadd.f32 %v806_v47, %v243_v41  ;;  %v497_v44 = vpop.f32.mrb[15].mxu0  ;;  %v309_v45 = vadd.f32 %v806_v47, %v308_v42  ;;  %v536_v46 = vpop.f32.mrb[15].mxu1 }
 0x10d   :  { %v340_v48 = vmul.f32 %v808_v49, %v244_v43  ;;  %v353_v50 = vmul.f32 %v808_v49, %v309_v45 }
 0x10e   :  { %v248_v51 = vpop.f32.mrb[16].mxu0  ;;  %v313_v52 = vpop.f32.mrb[16].mxu1 }
 0x10f   :  { %365 = vst [vmem:[%s939_s4 + $0x38] sm:$0xff] %v340_v48  ;;  %378 = vst [vmem:[%s939_s4 + $0xa0] sm:$0xff] %v353_v50  ;;  %v249_v53 = vadd.f32 %v806_v47, %v248_v51  ;;  %v500_v54 = vpop.f32.mrb[17].mxu0  ;;  %v314_v55 = vadd.f32 %v806_v47, %v313_v52  ;;  %v539_v56 = vpop.f32.mrb[17].mxu1 }
 0x111   :  { %v341_v57 = vmul.f32 %v808_v49, %v249_v53  ;;  %v354_v58 = vmul.f32 %v808_v49, %v314_v55 }
 0x112   :  { %v253_v59 = vpop.f32.mrb[18].mxu0  ;;  %v318_v60 = vpop.f32.mrb[18].mxu1 }
 0x113   :  { %366 = vst [vmem:[%s939_s4 + $0x40] sm:$0xff] %v341_v57  ;;  %379 = vst [vmem:[%s939_s4 + $0xa8] sm:$0xff] %v354_v58  ;;  %v254_v61 = vadd.f32 %v806_v47, %v253_v59  ;;  %v503_v62 = vpop.f32.mrb[19].mxu0  ;;  %v319_v63 = vadd.f32 %v806_v47, %v318_v60  ;;  %v542_v0 = vpop.f32.mrb[19].mxu1 }
 0x115   :  { %v342_v1 = vmul.f32 %v808_v49, %v254_v61  ;;  %v355_v2 = vmul.f32 %v808_v49, %v319_v63 }
 0x116   :  { %v258_v3 = vpop.f32.mrb[20].mxu0  ;;  %v323_v4 = vpop.f32.mrb[20].mxu1 }
 0x117   :  { %367 = vst [vmem:[%s939_s4 + $0x48] sm:$0xff] %v342_v1  ;;  %380 = vst [vmem:[%s939_s4 + $0xb0] sm:$0xff] %v355_v2  ;;  %v259_v5 = vadd.f32 %v806_v47, %v258_v3  ;;  %v506_v6 = vpop.f32.mrb[21].mxu0  ;;  %v324_v7 = vadd.f32 %v806_v47, %v323_v4  ;;  %v545_v8 = vpop.f32.mrb[21].mxu1 }
 0x119   :  { %v343_v9 = vmul.f32 %v808_v49, %v259_v5  ;;  %v356_v10 = vmul.f32 %v808_v49, %v324_v7 }
 0x11a   :  { %v263_v11 = vpop.f32.mrb[22].mxu0  ;;  %v328_v12 = vpop.f32.mrb[22].mxu1 }
 0x11b   :  { %368 = vst [vmem:[%s939_s4 + $0x50] sm:$0xff] %v343_v9  ;;  %381 = vst [vmem:[%s939_s4 + $0xb8] sm:$0xff] %v356_v10  ;;  %v264_v13 = vadd.f32 %v806_v47, %v263_v11  ;;  %v509_v14 = vpop.f32.mrb[23].mxu0  ;;  %v329_v15 = vadd.f32 %v806_v47, %v328_v12  ;;  %v548_v16 = vpop.f32.mrb[23].mxu1 }
 0x11d   :  { %v344_v17 = vmul.f32 %v808_v49, %v264_v13  ;;  %v357_v18 = vmul.f32 %v808_v49, %v329_v15 }
 0x11e   :  { %v268_v19 = vpop.f32.mrb[24].mxu0 }
 0x11f   :  { %369 = vst [vmem:[%s939_s4 + $0x58] sm:$0xff] %v344_v17  ;;  %382 = vst [vmem:[%s939_s4 + $0xc0] sm:$0xff] %v357_v18  ;;  %v269_v20 = vadd.f32 %v806_v47, %v268_v19  ;;  %v512_v21 = vpop.f32.mrb[25].mxu0 }
 0x121   :  { %v345_v22 = vmul.f32 %v808_v49, %v269_v20 }
 0x123   :  { %370 = vst [vmem:[%s939_s4 + $0x60] sm:$0xff] %v345_v22 }

</bundles_post_ra>
